<compile_context>
chip_gen: v6e
topology: v6e:2x2x1
jax: 0.10.0
libtpu: 0.0.40
codegen_flags: <defaults>
</compile_context>

<pallas_src>
import functools

import jax
import jax.numpy as jnp
from jax.experimental import pallas as pl
from jax.experimental.pallas import tpu as pltpu


def _round_up(x, m):
    return ((x + m - 1) // m) * m


def _pad_m(x, mp):
    if x.shape[-1] == mp:
        return x
    return jnp.pad(x, ((0, 0), (0, mp - x.shape[-1])))


def _bspec(shape, index_map, buffers=None):
    """BlockSpec, optionally requesting >2-deep pipelining (clean fallback)."""
    if buffers is not None:
        try:
            return pl.BlockSpec(shape, index_map,
                                pipeline_mode=pl.Buffered(buffer_count=buffers))
        except Exception:  # API drift -> default double buffering
            pass
    return pl.BlockSpec(shape, index_map)


# ----------------------------------------------------------------------------
# Pallas kernel: O = epilogue(sum_i W_i @ A_i + bias, extras) — lane-dense out
# ----------------------------------------------------------------------------
def _mm_kernel(*refs, n_mat, n_extra, epilogue, epi_arg=None):
    ws = refs[:n_mat]
    aa = refs[n_mat:2 * n_mat]
    b_ref = refs[2 * n_mat]
    ex = refs[2 * n_mat + 1: 2 * n_mat + 1 + n_extra]
    outs = refs[2 * n_mat + 1 + n_extra:]

    acc = jnp.dot(ws[0][...], aa[0][...], preferred_element_type=jnp.float32)
    for w_ref, a_ref in zip(ws[1:], aa[1:]):
        acc = acc + jnp.dot(w_ref[...], a_ref[...],
                            preferred_element_type=jnp.float32)
    acc = acc + b_ref[...]

    if epilogue == "none":
        outs[0][...] = acc
    elif epilogue == "relu":
        outs[0][...] = jnp.maximum(acc, 0.0)
    elif epilogue == "res_relu":                 # relu(acc + residual)
        outs[0][...] = jnp.maximum(acc + ex[0][...], 0.0)
    elif epilogue == "gru_gates":                # gate split + reset-gated state
        hid = epi_arg
        g = jax.nn.sigmoid(acc)
        outs[0][...] = g[:hid, :] * ex[0][...]   # r * h
        outs[1][...] = g[hid:, :]                # z
    elif epilogue == "gru_update":               # h_new = (1-z)*h + z*tanh(acc)
        q = jnp.tanh(acc)
        z = ex[0][...]
        outs[0][...] = (1.0 - z) * ex[1][...] + z * q
    else:
        raise ValueError(f"unknown epilogue {epilogue}")


def _run_mm(mats, bias, extras, out_rows, m, epilogue, epi_arg=None):
    """mats: list of (W (rows, K_i) f32, A (K_i, m) bf16) pairs (accumulated);
    bias (rows,) f32; extras: list of (r_e, m) f32 consumed by the epilogue.
    Returns one (r, m) f32 array per entry of out_rows."""
    n_mat = len(mats)
    rows = mats[0][0].shape[0]

    # ~8 grid steps of 256..1024 lanes -> DMA/compute overlap + v7x megacore.
    tm = min(1024, max(256, _round_up(-(-m // 8), 128)))
    tm = min(tm, _round_up(m, 128))
    mp = _round_up(m, tm)
    nsteps = mp // tm
    buf = 3 if nsteps >= 4 else None

    ws = [w.astype(jnp.bfloat16) for w, _ in mats]
    aa = [_pad_m(a, mp) for _, a in mats]                  # already bf16
    ex = [_pad_m(e, mp).astype(jnp.float32) for e in extras]

    in_specs = [pl.BlockSpec(w.shape, lambda i: (0, 0)) for w in ws]        # resident
    in_specs += [_bspec((a.shape[0], tm), lambda i: (0, i), buffers=buf) for a in aa]
    in_specs += [pl.BlockSpec((rows, 1), lambda i: (0, 0))]                 # bias
    in_specs += [_bspec((e.shape[0], tm), lambda i: (0, i), buffers=buf) for e in ex]

    multi = len(out_rows) > 1
    out_shape = tuple(jax.ShapeDtypeStruct((r, mp), jnp.float32) for r in out_rows)
    out_specs = tuple(pl.BlockSpec((r, tm), lambda i: (0, i)) for r in out_rows)
    if not multi:
        out_shape, out_specs = out_shape[0], out_specs[0]

    kernel = functools.partial(_mm_kernel, n_mat=n_mat, n_extra=len(ex),
                               epilogue=epilogue, epi_arg=epi_arg)
    outs = pl.pallas_call(
        kernel,
        out_shape=out_shape,
        grid=(nsteps,),
        in_specs=in_specs,
        out_specs=out_specs,
        compiler_params=pltpu.CompilerParams(
            dimension_semantics=("parallel",),
            vmem_limit_bytes=32 * 1024 * 1024),
    )(*ws, *aa, bias.reshape(rows, 1).astype(jnp.float32), *ex)

    if not multi:
        return outs if mp == m else outs[:, :m]
    return tuple(o if mp == m else o[:, :m] for o in outs)


# ----------------------------------------------------------------------------
# XLA glue: patch builders (bf16) and deconv phase decomposition
# ----------------------------------------------------------------------------
def _conv_patches(x_cnhw, stride):
    """3x3 im2col (pad=1) on CNHW input -> A (Cin*9, B*Ho*Wo) in bf16,
    row order (cin, ky*3+kx) matching an OIHW weight .reshape(Cout, Cin*9)."""
    x = x_cnhw.astype(jnp.bfloat16)
    c, b, h, w = x.shape
    xp = jnp.pad(x, ((0, 0), (0, 0), (1, 1), (1, 1)))
    ho = (h + 2 - 3) // stride + 1
    wo = (w + 2 - 3) // stride + 1
    pats = [xp[:, :, dy:dy + stride * ho:stride, dx:dx + stride * wo:stride]
            for dy in range(3) for dx in range(3)]
    a = jnp.stack(pats, axis=1)                     # (Cin, 9, B, Ho, Wo)
    return a.reshape(c * 9, b * ho * wo), ho, wo


def _phase_patches(x_cnhw):
    """2x2-tap patches (shifts (0,0),(0,1),(1,0),(1,1), zero-padded bottom/right)
    for the phase-decomposed stride-2 deconv: A (Cin*4, B*H*W) in bf16,
    row order (cin, di*2+dj)."""
    x = x_cnhw.astype(jnp.bfloat16)
    c, b, h, w = x.shape
    xp = jnp.pad(x, ((0, 0), (0, 0), (0, 1), (0, 1)))
    pats = [xp[:, :, di:di + h, dj:dj + w] for di in (0, 1) for dj in (0, 1)]
    a = jnp.stack(pats, axis=1)                     # (Cin, 4, B, H, W)
    return a.reshape(c * 4, b * h * w)


def _deconv_weight(w_iohw):
    """(Cin, Cout, 3, 3) ConvTranspose weight -> equivalent conv weight
    (Cout, Cin, 3, 3), spatially flipped."""
    return jnp.transpose(jnp.flip(w_iohw, axis=(2, 3)), (1, 0, 2, 3))


def _phase_weight(wk):
    """Phase (sub-pixel) decomposition of ConvTranspose2d(k=3, s=2, p=1, op=1).
    wk: conv-equivalent weight (Co, Ci, 3, 3).  Returns (4*Co, Ci*4) with row
    order (py, px, co) and column order (ci, di*2+dj):
      out[:, :, 2i+py, 2j+px] = sum_taps wk[ky(py,di), kx(px,dj)] * x[i+di, j+dj]."""
    co, ci = wk.shape[:2]
    zero = jnp.zeros((co, ci), wk.dtype)
    kmap = {(0, 0): 1, (1, 0): 0, (1, 1): 2}   # (output parity, tap) -> kernel idx
    blocks = []
    for py in (0, 1):
        for px in (0, 1):
            taps = []
            for di in (0, 1):
                for dj in (0, 1):
                    ky, kx = kmap.get((py, di)), kmap.get((px, dj))
                    taps.append(zero if (ky is None or kx is None)
                                else wk[:, :, ky, kx])
            blocks.append(jnp.stack(taps, axis=2).reshape(co, ci * 4))
    return jnp.concatenate(blocks, axis=0)


def _phase_out_to_map(y_phase, co, b, h, w):
    """(4*co, b*h*w) phase-major GEMM output -> (co, b, 2h, 2w) CNHW map."""
    y = y_phase.reshape(2, 2, co, b, h, w)
    return jnp.transpose(y, (2, 3, 4, 0, 5, 1)).reshape(co, b, 2 * h, 2 * w)


def _map_to_phase(x_cnhw):
    """(c, b, 2h, 2w) CNHW map -> (4*c, b*h*w) phase-major rows (residual path)."""
    c, b, hh, ww = x_cnhw.shape
    h, w = hh // 2, ww // 2
    y = x_cnhw.reshape(c, b, h, 2, w, 2)
    return jnp.transpose(y, (3, 5, 0, 1, 2, 4)).reshape(4 * c, b * h * w)


# ----------------------------------------------------------------------------
# SliceCostRegNetRED forward
# ----------------------------------------------------------------------------
def slice_cost_reg_net_red_cnhw(params, cost_c, s1, s2, up=True):
    """Channel-major (CNHW) forward.  Recurrent callers should use this entry
    point directly and keep state1/state2 in CNHW between steps."""
    bc = params["conv1"]["w"].shape[0]
    bc2 = 2 * bc
    _, B, H, W = cost_c.shape
    H2, W2 = s2.shape[2], s2.shape[3]
    M1, M2 = B * H * W, B * H2 * W2
    f32 = jnp.float32
    zeros1, zeros2 = jnp.zeros((bc,), f32), jnp.zeros((bc2,), f32)

    # conv1: ConvReLU(in_channels, bc, 3, 1, 1)   (bias-free conv + ReLU)
    a_cost, _, _ = _conv_patches(cost_c, 1)
    c1 = _run_mm([(params["conv1"]["w"].reshape(bc, -1), a_cost)],
                 zeros1, [], [bc], M1, "relu")
    c1_map = c1.reshape(bc, B, H, W)

    # ConvGRU 1 (hidden = bc): concat [x, h] expressed as two accumulated GEMMs
    h1 = s1.astype(f32).reshape(bc, M1)
    a_c1, _, _ = _conv_patches(c1_map, 1)
    a_h1, _, _ = _conv_patches(s1, 1)
    wg = params["gru1_gates"]["w"]
    rh1, z1 = _run_mm(
        [(wg[:, :bc].reshape(2 * bc, -1), a_c1),
         (wg[:, bc:].reshape(2 * bc, -1), a_h1)],
        params["gru1_gates"]["b"], [h1], [bc, bc], M1, "gru_gates", epi_arg=bc)
    a_rh1, _, _ = _conv_patches(rh1.reshape(bc, B, H, W), 1)
    wc = params["gru1_can"]["w"]
    rc1 = _run_mm(
        [(wc[:, :bc].reshape(bc, -1), a_c1),
         (wc[:, bc:].reshape(bc, -1), a_rh1)],
        params["gru1_can"]["b"], [z1, h1], [bc], M1, "gru_update")
    rc1_map = rc1.reshape(bc, B, H, W)

    # conv2: ConvReLU(bc, 2*bc, 3, 2, 1)
    a2, Ho2, Wo2 = _conv_patches(rc1_map, 2)
    c2 = _run_mm([(params["conv2"]["w"].reshape(bc2, -1), a2)],
                 zeros2, [], [bc2], B * Ho2 * Wo2, "relu")
    c2_map = c2.reshape(bc2, B, Ho2, Wo2)

    # ConvGRU 2 (hidden = 2*bc)
    h2 = s2.astype(f32).reshape(bc2, M2)
    a_c2, _, _ = _conv_patches(c2_map, 1)
    a_h2, _, _ = _conv_patches(s2, 1)
    wg = params["gru2_gates"]["w"]
    rh2, z2 = _run_mm(
        [(wg[:, :bc2].reshape(2 * bc2, -1), a_c2),
         (wg[:, bc2:].reshape(2 * bc2, -1), a_h2)],
        params["gru2_gates"]["b"], [h2], [bc2, bc2], M2, "gru_gates", epi_arg=bc2)
    a_rh2, _, _ = _conv_patches(rh2.reshape(bc2, B, H2, W2), 1)
    wc = params["gru2_can"]["w"]
    rc2 = _run_mm(
        [(wc[:, :bc2].reshape(bc2, -1), a_c2),
         (wc[:, bc2:].reshape(bc2, -1), a_rh2)],
        params["gru2_can"]["b"], [z2, h2], [bc2], M2, "gru_update")
    rc2_map = rc2.reshape(bc2, B, H2, W2)

    # upconv1: phase-decomposed ConvTranspose2d(2bc -> bc) fused with
    # bias + reg_cost1 residual + ReLU.
    a4 = _phase_patches(rc2_map)                                   # (4*bc2, M2)
    wph1 = _phase_weight(_deconv_weight(params["upconv1"]["w"]))   # (4*bc, 4*bc2)
    rc1_ph = _map_to_phase(rc1_map)                                # residual
    u11_ph = _run_mm([(wph1, a4)], jnp.tile(params["upconv1"]["b"], 4),
                     [rc1_ph], [4 * bc], M2, "res_relu")
    u11_map = _phase_out_to_map(u11_ph, bc, B, H2, W2)             # (bc,B,H,W)

    # upconv2d: ConvTranspose2d(bc, 1) if up else Conv2d(bc, 1)
    if up:
        a4f = _phase_patches(u11_map)                              # (4*bc, M1)
        wph2 = _phase_weight(_deconv_weight(params["upconv2d"]["w"]))
        reg_ph = _run_mm([(wph2, a4f)], jnp.tile(params["upconv2d"]["b"], 4),
                         [], [4], M1, "none")
        reg_map = _phase_out_to_map(reg_ph, 1, B, H, W)            # (1,B,2H,2W)
    else:
        af, _, _ = _conv_patches(u11_map, 1)
        reg = _run_mm([(params["upconv2d"]["w"].reshape(1, -1), af)],
                      params["upconv2d"]["b"], [], [1], M1, "none")
        reg_map = reg.reshape(1, B, H, W)

    return reg_map, rc1_map, rc2_map


def slice_cost_reg_net_red(params, cost, state1, state2, up=True):
    """NCHW boundary wrapper (matches the PyTorch module interface)."""
    reg, rc1, rc2 = slice_cost_reg_net_red_cnhw(
        params,
        jnp.transpose(cost, (1, 0, 2, 3)),
        jnp.transpose(state1, (1, 0, 2, 3)),
        jnp.transpose(state2, (1, 0, 2, 3)),
        up=up)
    return (jnp.transpose(reg, (1, 0, 2, 3)),
            jnp.transpose(rc1, (1, 0, 2, 3)),
            jnp.transpose(rc2, (1, 0, 2, 3)))


# ----------------------------------------------------------------------------
# Pure-JAX reference (lax.conv) with matched bf16 operands, for validation
# ----------------------------------------------------------------------------
def _conv_ref(x, w, b, stride):
    y = jax.lax.conv_general_dilated(
        x.astype(jnp.bfloat16), w.astype(jnp.bfloat16),
        window_strides=(stride, stride), padding=((1, 1), (1, 1)),
        dimension_numbers=("NCHW", "OIHW", "NCHW"),
        preferred_element_type=jnp.float32)
    return y if b is None else y + b[None, :, None, None]


def _deconv_ref(x, w_iohw, b):
    y = jax.lax.conv_general_dilated(
        x.astype(jnp.bfloat16), _deconv_weight(w_iohw).astype(jnp.bfloat16),
        window_strides=(1, 1), padding=((1, 2), (1, 2)), lhs_dilation=(2, 2),
        dimension_numbers=("NCHW", "OIHW", "NCHW"),
        preferred_element_type=jnp.float32)
    return y if b is None else y + b[None, :, None, None]


def slice_cost_reg_net_red_ref(params, cost, state1, state2, up=True):
    bc = params["conv1"]["w"].shape[0]
    bc2 = 2 * bc
    c1 = jax.nn.relu(_conv_ref(cost, params["conv1"]["w"], None, 1))
    g = jax.nn.sigmoid(_conv_ref(jnp.concatenate([c1, state1], 1),
                                 params["gru1_gates"]["w"],
                                 params["gru1_gates"]["b"], 1))
    r, z = g[:, :bc], g[:, bc:]
    q = jnp.tanh(_conv_ref(jnp.concatenate([c1, r * state1], 1),
                           params["gru1_can"]["w"], params["gru1_can"]["b"], 1))
    rc1 = (1.0 - z) * state1 + z * q
    c2 = jax.nn.relu(_conv_ref(rc1, params["conv2"]["w"], None, 2))
    g = jax.nn.sigmoid(_conv_ref(jnp.concatenate([c2, state2], 1),
                                 params["gru2_gates"]["w"],
                                 params["gru2_gates"]["b"], 1))
    r, z = g[:, :bc2], g[:, bc2:]
    q = jnp.tanh(_conv_ref(jnp.concatenate([c2, r * state2], 1),
                           params["gru2_can"]["w"], params["gru2_can"]["b"], 1))
    rc2 = (1.0 - z) * state2 + z * q
    up1 = _deconv_ref(rc2, params["upconv1"]["w"], params["upconv1"]["b"])
    u11 = jax.nn.relu(up1 + rc1)
    if up:
        reg = _deconv_ref(u11, params["upconv2d"]["w"], params["upconv2d"]["b"])
    else:
        reg = _conv_ref(u11, params["upconv2d"]["w"], params["upconv2d"]["b"], 1)
    return reg, rc1, rc2


# ----------------------------------------------------------------------------
# Deterministic parameter init (shapes from the module __init__)
# ----------------------------------------------------------------------------
def make_params(key, in_channels, base_channels=8, up=True):
    ks = iter(jax.random.split(key, 16))
    bc = base_channels

    def w(shape):
        return 0.1 * jax.random.normal(next(ks), shape, jnp.float32)

    p = {
        "conv1": {"w": w((bc, in_channels, 3, 3))},
        "gru1_gates": {"w": w((2 * bc, 2 * bc, 3, 3)), "b": w((2 * bc,))},
        "gru1_can": {"w": w((bc, 2 * bc, 3, 3)), "b": w((bc,))},
        "conv2": {"w": w((2 * bc, bc, 3, 3))},
        "gru2_gates": {"w": w((4 * bc, 4 * bc, 3, 3)), "b": w((4 * bc,))},
        "gru2_can": {"w": w((2 * bc, 4 * bc, 3, 3)), "b": w((2 * bc,))},
        "upconv1": {"w": w((2 * bc, bc, 3, 3)), "b": w((bc,))},  # ConvTranspose (I,O,kh,kw)
    }
    if up:
        p["upconv2d"] = {"w": w((bc, 1, 3, 3)), "b": w((1,))}    # ConvTranspose
    else:
        p["upconv2d"] = {"w": w((1, bc, 3, 3)), "b": w((1,))}    # Conv2d
    return p


if __name__ == "__main__":
    key = jax.random.PRNGKey(0)
    B, Cin, H, W, bc = 2, 16, 16, 16, 8
    kp, kc, k1, k2 = jax.random.split(key, 4)

    params = make_params(kp, in_channels=Cin, base_channels=bc, up=True)
    cost = 0.5 * jax.random.normal(kc, (B, Cin, H, W), jnp.float32)
    state1 = 0.5 * jax.random.normal(k1, (B, bc, H, W), jnp.float32)
    state2 = 0.5 * jax.random.normal(k2, (B, 2 * bc, H // 2, W // 2), jnp.float32)

    fwd = jax.jit(functools.partial(slice_cost_reg_net_red, up=True))
    reg_cost, new_s1, new_s2 = fwd(params, cost, state1, state2)
    jax.block_until_ready((reg_cost, new_s1, new_s2))

    assert reg_cost.shape == (B, 1, 2 * H, 2 * W)
    assert new_s1.shape == (B, bc, H, W)
    assert new_s2.shape == (B, 2 * bc, H // 2, W // 2)

    # validate against the pure-JAX reference (same bf16 operand quantization)
    ref = jax.jit(functools.partial(slice_cost_reg_net_red_ref, up=True))(
        params, cost, state1, state2)
    for got, want in zip((reg_cost, new_s1, new_s2), ref):
        diff = float(jnp.max(jnp.abs(got - want)))
        assert diff < 5e-2, f"mismatch vs reference: max|diff|={diff}"

    print("KERNEL_OK")
</pallas_src>

<mosaic_0001>
module attributes {stable_mosaic.version = 11 : i64} {
  func.func @_mm_kernel(%arg0: i32, %arg1: memref<8x144xbf16, #tpu.memory_space<vmem>>, %arg2: memref<144x256xbf16, #tpu.memory_space<vmem>>, %arg3: memref<8x1xf32, #tpu.memory_space<vmem>>, %arg4: memref<8x256xf32, #tpu.memory_space<vmem>>) attributes {dimension_semantics = [#tpu.dimension_semantics<parallel>], iteration_bounds = array<i64: 2>, scalar_prefetch = 0 : i64, scratch_operands = 0 : i64, tpu.core_type = #tpu.core_type<tc>, window_params = [{pipeline_mode = #tpu.pipeline_mode<synchronous>, transform_indices = @transform_0, window_bounds = array<i64: 8, 144>}, {transform_indices = @transform_1, window_bounds = array<i64: 144, 256>}, {pipeline_mode = #tpu.pipeline_mode<synchronous>, transform_indices = @transform_2, window_bounds = array<i64: 8, 1>}, {transform_indices = @transform_3, window_bounds = array<i64: 8, 256>}]} {
    %c0 = arith.constant 0 : index
    %c0_0 = arith.constant 0 : index
    %0 = vector.load %arg1[%c0, %c0_0] : memref<8x144xbf16, #tpu.memory_space<vmem>>, vector<8x144xbf16>
    %c0_1 = arith.constant 0 : index
    %c0_2 = arith.constant 0 : index
    %1 = vector.load %arg2[%c0_1, %c0_2] : memref<144x256xbf16, #tpu.memory_space<vmem>>, vector<144x256xbf16>
    %cst = arith.constant dense<0.000000e+00> : vector<8x256xf32>
    %2 = tpu.matmul %0, %1, %cst {dimension_numbers = #tpu.dot_dimension_numbers<[1], [0], [0], [1], [0, 0, 1, 1], [], []>} : vector<8x144xbf16>, vector<144x256xbf16>, vector<8x256xf32> -> vector<8x256xf32>
    %c0_3 = arith.constant 0 : index
    %c0_4 = arith.constant 0 : index
    %3 = vector.load %arg3[%c0_3, %c0_4] : memref<8x1xf32, #tpu.memory_space<vmem>>, vector<8x1xf32>
    %4 = vector.broadcast %3 : vector<8x1xf32> to vector<8x256xf32>
    %5 = arith.addf %2, %4 : vector<8x256xf32>
    %cst_5 = arith.constant 0.000000e+00 : f32
    %6 = vector.broadcast %cst_5 : f32 to vector<8x256xf32>
    %7 = arith.maximumf %5, %6 : vector<8x256xf32>
    %c0_6 = arith.constant 0 : index
    %c0_7 = arith.constant 0 : index
    %8 = vector.load %arg4[%c0_6, %c0_7] : memref<8x256xf32, #tpu.memory_space<vmem>>, vector<8x256xf32>
    tpu.vector_store %arg4[%c0_6, %c0_7], %7 {strides = array<i32>} : memref<8x256xf32, #tpu.memory_space<vmem>>, vector<8x256xf32>,
    return
  }
  func.func @transform_0(%arg0: i32) -> (i32, i32) {
    %c0_i32 = arith.constant 0 : i32
    %c0_i32_0 = arith.constant 0 : i32
    %c0_i32_1 = arith.constant 0 : i32
    return %c0_i32, %c0_i32_0 : i32, i32
  }
  func.func @transform_1(%arg0: i32) -> (i32, i32) {
    %c0_i32 = arith.constant 0 : i32
    %c0_i32_0 = arith.constant 0 : i32
    return %c0_i32, %arg0 : i32, i32
  }
  func.func @transform_2(%arg0: i32) -> (i32, i32) {
    %c0_i32 = arith.constant 0 : i32
    %c0_i32_0 = arith.constant 0 : i32
    %c0_i32_1 = arith.constant 0 : i32
    return %c0_i32, %c0_i32_0 : i32, i32
  }
  func.func @transform_3(%arg0: i32) -> (i32, i32) {
    %c0_i32 = arith.constant 0 : i32
    %c0_i32_0 = arith.constant 0 : i32
    return %c0_i32, %arg0 : i32, i32
  }
}

module attributes {stable_mosaic.version = 11 : i64} {
  func.func @_mm_kernel(%arg0: i32, %arg1: memref<16x72xbf16, #tpu.memory_space<vmem>>, %arg2: memref<16x72xbf16, #tpu.memory_space<vmem>>, %arg3: memref<72x256xbf16, #tpu.memory_space<vmem>>, %arg4: memref<72x256xbf16, #tpu.memory_space<vmem>>, %arg5: memref<16x1xf32, #tpu.memory_space<vmem>>, %arg6: memref<8x256xf32, #tpu.memory_space<vmem>>, %arg7: memref<8x256xf32, #tpu.memory_space<vmem>>, %arg8: memref<8x256xf32, #tpu.memory_space<vmem>>) attributes {dimension_semantics = [#tpu.dimension_semantics<parallel>], iteration_bounds = array<i64: 2>, scalar_prefetch = 0 : i64, scratch_operands = 0 : i64, tpu.core_type = #tpu.core_type<tc>, window_params = [{pipeline_mode = #tpu.pipeline_mode<synchronous>, transform_indices = @transform_0, window_bounds = array<i64: 16, 72>}, {pipeline_mode = #tpu.pipeline_mode<synchronous>, transform_indices = @transform_1, window_bounds = array<i64: 16, 72>}, {transform_indices = @transform_2, window_bounds = array<i64: 72, 256>}, {transform_indices = @transform_3, window_bounds = array<i64: 72, 256>}, {pipeline_mode = #tpu.pipeline_mode<synchronous>, transform_indices = @transform_4, window_bounds = array<i64: 16, 1>}, {transform_indices = @transform_5, window_bounds = array<i64: 8, 256>}, {transform_indices = @transform_6, window_bounds = array<i64: 8, 256>}, {transform_indices = @transform_7, window_bounds = array<i64: 8, 256>}]} {
    %c0 = arith.constant 0 : index
    %c0_0 = arith.constant 0 : index
    %0 = vector.load %arg1[%c0, %c0_0] : memref<16x72xbf16, #tpu.memory_space<vmem>>, vector<16x72xbf16>
    %c0_1 = arith.constant 0 : index
    %c0_2 = arith.constant 0 : index
    %1 = vector.load %arg3[%c0_1, %c0_2] : memref<72x256xbf16, #tpu.memory_space<vmem>>, vector<72x256xbf16>
    %cst = arith.constant dense<0.000000e+00> : vector<16x256xf32>
    %2 = tpu.matmul %0, %1, %cst {dimension_numbers = #tpu.dot_dimension_numbers<[1], [0], [0], [1], [0, 0, 1, 1], [], []>} : vector<16x72xbf16>, vector<72x256xbf16>, vector<16x256xf32> -> vector<16x256xf32>
    %c0_3 = arith.constant 0 : index
    %c0_4 = arith.constant 0 : index
    %3 = vector.load %arg2[%c0_3, %c0_4] : memref<16x72xbf16, #tpu.memory_space<vmem>>, vector<16x72xbf16>
    %c0_5 = arith.constant 0 : index
    %c0_6 = arith.constant 0 : index
    %4 = vector.load %arg4[%c0_5, %c0_6] : memref<72x256xbf16, #tpu.memory_space<vmem>>, vector<72x256xbf16>
    %cst_7 = arith.constant dense<0.000000e+00> : vector<16x256xf32>
    %5 = tpu.matmul %3, %4, %cst_7 {dimension_numbers = #tpu.dot_dimension_numbers<[1], [0], [0], [1], [0, 0, 1, 1], [], []>} : vector<16x72xbf16>, vector<72x256xbf16>, vector<16x256xf32> -> vector<16x256xf32>
    %6 = arith.addf %2, %5 : vector<16x256xf32>
    %c0_8 = arith.constant 0 : index
    %c0_9 = arith.constant 0 : index
    %7 = vector.load %arg5[%c0_8, %c0_9] : memref<16x1xf32, #tpu.memory_space<vmem>>, vector<16x1xf32>
    %8 = vector.broadcast %7 : vector<16x1xf32> to vector<16x256xf32>
    %9 = arith.addf %6, %8 : vector<16x256xf32>
    %10 = arith.negf %9 : vector<16x256xf32>
    %11 = math.exp %10 : vector<16x256xf32>
    %cst_10 = arith.constant 1.000000e+00 : f32
    %12 = vector.broadcast %cst_10 : f32 to vector<16x256xf32>
    %13 = arith.addf %12, %11 : vector<16x256xf32>
    %14 = arith.divf %12, %13 : vector<16x256xf32>
    %15 = vector.extract_strided_slice %14 {offsets = [0, 0], sizes = [8, 256], strides = [1, 1]} : vector<16x256xf32> to vector<8x256xf32>
    %c0_11 = arith.constant 0 : index
    %c0_12 = arith.constant 0 : index
    %16 = vector.load %arg6[%c0_11, %c0_12] : memref<8x256xf32, #tpu.memory_space<vmem>>, vector<8x256xf32>
    %17 = arith.mulf %15, %16 : vector<8x256xf32>
    %c0_13 = arith.constant 0 : index
    %c0_14 = arith.constant 0 : index
    %18 = vector.load %arg7[%c0_13, %c0_14] : memref<8x256xf32, #tpu.memory_space<vmem>>, vector<8x256xf32>
    tpu.vector_store %arg7[%c0_13, %c0_14], %17 {strides = array<i32>} : memref<8x256xf32, #tpu.memory_space<vmem>>, vector<8x256xf32>,
    %19 = vector.extract_strided_slice %14 {offsets = [8, 0], sizes = [8, 256], strides = [1, 1]} : vector<16x256xf32> to vector<8x256xf32>
    %c0_15 = arith.constant 0 : index
    %c0_16 = arith.constant 0 : index
    %20 = vector.load %arg8[%c0_15, %c0_16] : memref<8x256xf32, #tpu.memory_space<vmem>>, vector<8x256xf32>
    tpu.vector_store %arg8[%c0_15, %c0_16], %19 {strides = array<i32>} : memref<8x256xf32, #tpu.memory_space<vmem>>, vector<8x256xf32>,
    return
  }
  func.func @transform_0(%arg0: i32) -> (i32, i32) {
    %c0_i32 = arith.constant 0 : i32
    %c0_i32_0 = arith.constant 0 : i32
    %c0_i32_1 = arith.constant 0 : i32
    return %c0_i32, %c0_i32_0 : i32, i32
  }
  func.func @transform_1(%arg0: i32) -> (i32, i32) {
    %c0_i32 = arith.constant 0 : i32
    %c0_i32_0 = arith.constant 0 : i32
    %c0_i32_1 = arith.constant 0 : i32
    return %c0_i32, %c0_i32_0 : i32, i32
  }
  func.func @transform_2(%arg0: i32) -> (i32, i32) {
    %c0_i32 = arith.constant 0 : i32
    %c0_i32_0 = arith.constant 0 : i32
    return %c0_i32, %arg0 : i32, i32
  }
  func.func @transform_3(%arg0: i32) -> (i32, i32) {
    %c0_i32 = arith.constant 0 : i32
    %c0_i32_0 = arith.constant 0 : i32
    return %c0_i32, %arg0 : i32, i32
  }
  func.func @transform_4(%arg0: i32) -> (i32, i32) {
    %c0_i32 = arith.constant 0 : i32
    %c0_i32_0 = arith.constant 0 : i32
    %c0_i32_1 = arith.constant 0 : i32
    return %c0_i32, %c0_i32_0 : i32, i32
  }
  func.func @transform_5(%arg0: i32) -> (i32, i32) {
    %c0_i32 = arith.constant 0 : i32
    %c0_i32_0 = arith.constant 0 : i32
    return %c0_i32, %arg0 : i32, i32
  }
  func.func @transform_6(%arg0: i32) -> (i32, i32) {
    %c0_i32 = arith.constant 0 : i32
    %c0_i32_0 = arith.constant 0 : i32
    return %c0_i32, %arg0 : i32, i32
  }
  func.func @transform_7(%arg0: i32) -> (i32, i32) {
    %c0_i32 = arith.constant 0 : i32
    %c0_i32_0 = arith.constant 0 : i32
    return %c0_i32, %arg0 : i32, i32
  }
}

module attributes {stable_mosaic.version = 11 : i64} {
  func.func @_mm_kernel(%arg0: i32, %arg1: memref<8x72xbf16, #tpu.memory_space<vmem>>, %arg2: memref<8x72xbf16, #tpu.memory_space<vmem>>, %arg3: memref<72x256xbf16, #tpu.memory_space<vmem>>, %arg4: memref<72x256xbf16, #tpu.memory_space<vmem>>, %arg5: memref<8x1xf32, #tpu.memory_space<vmem>>, %arg6: memref<8x256xf32, #tpu.memory_space<vmem>>, %arg7: memref<8x256xf32, #tpu.memory_space<vmem>>, %arg8: memref<8x256xf32, #tpu.memory_space<vmem>>) attributes {dimension_semantics = [#tpu.dimension_semantics<parallel>], iteration_bounds = array<i64: 2>, scalar_prefetch = 0 : i64, scratch_operands = 0 : i64, tpu.core_type = #tpu.core_type<tc>, window_params = [{pipeline_mode = #tpu.pipeline_mode<synchronous>, transform_indices = @transform_0, window_bounds = array<i64: 8, 72>}, {pipeline_mode = #tpu.pipeline_mode<synchronous>, transform_indices = @transform_1, window_bounds = array<i64: 8, 72>}, {transform_indices = @transform_2, window_bounds = array<i64: 72, 256>}, {transform_indices = @transform_3, window_bounds = array<i64: 72, 256>}, {pipeline_mode = #tpu.pipeline_mode<synchronous>, transform_indices = @transform_4, window_bounds = array<i64: 8, 1>}, {transform_indices = @transform_5, window_bounds = array<i64: 8, 256>}, {transform_indices = @transform_6, window_bounds = array<i64: 8, 256>}, {transform_indices = @transform_7, window_bounds = array<i64: 8, 256>}]} {
    %c0 = arith.constant 0 : index
    %c0_0 = arith.constant 0 : index
    %0 = vector.load %arg1[%c0, %c0_0] : memref<8x72xbf16, #tpu.memory_space<vmem>>, vector<8x72xbf16>
    %c0_1 = arith.constant 0 : index
    %c0_2 = arith.constant 0 : index
    %1 = vector.load %arg3[%c0_1, %c0_2] : memref<72x256xbf16, #tpu.memory_space<vmem>>, vector<72x256xbf16>
    %cst = arith.constant dense<0.000000e+00> : vector<8x256xf32>
    %2 = tpu.matmul %0, %1, %cst {dimension_numbers = #tpu.dot_dimension_numbers<[1], [0], [0], [1], [0, 0, 1, 1], [], []>} : vector<8x72xbf16>, vector<72x256xbf16>, vector<8x256xf32> -> vector<8x256xf32>
    %c0_3 = arith.constant 0 : index
    %c0_4 = arith.constant 0 : index
    %3 = vector.load %arg2[%c0_3, %c0_4] : memref<8x72xbf16, #tpu.memory_space<vmem>>, vector<8x72xbf16>
    %c0_5 = arith.constant 0 : index
    %c0_6 = arith.constant 0 : index
    %4 = vector.load %arg4[%c0_5, %c0_6] : memref<72x256xbf16, #tpu.memory_space<vmem>>, vector<72x256xbf16>
    %cst_7 = arith.constant dense<0.000000e+00> : vector<8x256xf32>
    %5 = tpu.matmul %3, %4, %cst_7 {dimension_numbers = #tpu.dot_dimension_numbers<[1], [0], [0], [1], [0, 0, 1, 1], [], []>} : vector<8x72xbf16>, vector<72x256xbf16>, vector<8x256xf32> -> vector<8x256xf32>
    %6 = arith.addf %2, %5 : vector<8x256xf32>
    %c0_8 = arith.constant 0 : index
    %c0_9 = arith.constant 0 : index
    %7 = vector.load %arg5[%c0_8, %c0_9] : memref<8x1xf32, #tpu.memory_space<vmem>>, vector<8x1xf32>
    %8 = vector.broadcast %7 : vector<8x1xf32> to vector<8x256xf32>
    %9 = arith.addf %6, %8 : vector<8x256xf32>
    %10 = math.tanh %9 : vector<8x256xf32>
    %c0_10 = arith.constant 0 : index
    %c0_11 = arith.constant 0 : index
    %11 = vector.load %arg6[%c0_10, %c0_11] : memref<8x256xf32, #tpu.memory_space<vmem>>, vector<8x256xf32>
    %cst_12 = arith.constant 1.000000e+00 : f32
    %12 = vector.broadcast %cst_12 : f32 to vector<8x256xf32>
    %13 = arith.subf %12, %11 : vector<8x256xf32>
    %c0_13 = arith.constant 0 : index
    %c0_14 = arith.constant 0 : index
    %14 = vector.load %arg7[%c0_13, %c0_14] : memref<8x256xf32, #tpu.memory_space<vmem>>, vector<8x256xf32>
    %15 = arith.mulf %13, %14 : vector<8x256xf32>
    %16 = arith.mulf %11, %10 : vector<8x256xf32>
    %17 = arith.addf %15, %16 : vector<8x256xf32>
    %c0_15 = arith.constant 0 : index
    %c0_16 = arith.constant 0 : index
    %18 = vector.load %arg8[%c0_15, %c0_16] : memref<8x256xf32, #tpu.memory_space<vmem>>, vector<8x256xf32>
    tpu.vector_store %arg8[%c0_15, %c0_16], %17 {strides = array<i32>} : memref<8x256xf32, #tpu.memory_space<vmem>>, vector<8x256xf32>,
    return
  }
  func.func @transform_0(%arg0: i32) -> (i32, i32) {
    %c0_i32 = arith.constant 0 : i32
    %c0_i32_0 = arith.constant 0 : i32
    %c0_i32_1 = arith.constant 0 : i32
    return %c0_i32, %c0_i32_0 : i32, i32
  }
  func.func @transform_1(%arg0: i32) -> (i32, i32) {
    %c0_i32 = arith.constant 0 : i32
    %c0_i32_0 = arith.constant 0 : i32
    %c0_i32_1 = arith.constant 0 : i32
    return %c0_i32, %c0_i32_0 : i32, i32
  }
  func.func @transform_2(%arg0: i32) -> (i32, i32) {
    %c0_i32 = arith.constant 0 : i32
    %c0_i32_0 = arith.constant 0 : i32
    return %c0_i32, %arg0 : i32, i32
  }
  func.func @transform_3(%arg0: i32) -> (i32, i32) {
    %c0_i32 = arith.constant 0 : i32
    %c0_i32_0 = arith.constant 0 : i32
    return %c0_i32, %arg0 : i32, i32
  }
  func.func @transform_4(%arg0: i32) -> (i32, i32) {
    %c0_i32 = arith.constant 0 : i32
    %c0_i32_0 = arith.constant 0 : i32
    %c0_i32_1 = arith.constant 0 : i32
    return %c0_i32, %c0_i32_0 : i32, i32
  }
  func.func @transform_5(%arg0: i32) -> (i32, i32) {
    %c0_i32 = arith.constant 0 : i32
    %c0_i32_0 = arith.constant 0 : i32
    return %c0_i32, %arg0 : i32, i32
  }
  func.func @transform_6(%arg0: i32) -> (i32, i32) {
    %c0_i32 = arith.constant 0 : i32
    %c0_i32_0 = arith.constant 0 : i32
    return %c0_i32, %arg0 : i32, i32
  }
  func.func @transform_7(%arg0: i32) -> (i32, i32) {
    %c0_i32 = arith.constant 0 : i32
    %c0_i32_0 = arith.constant 0 : i32
    return %c0_i32, %arg0 : i32, i32
  }
}

module attributes {stable_mosaic.version = 11 : i64} {
  func.func @_mm_kernel(%arg0: i32, %arg1: memref<16x72xbf16, #tpu.memory_space<vmem>>, %arg2: memref<72x128xbf16, #tpu.memory_space<vmem>>, %arg3: memref<16x1xf32, #tpu.memory_space<vmem>>, %arg4: memref<16x128xf32, #tpu.memory_space<vmem>>) attributes {dimension_semantics = [#tpu.dimension_semantics<parallel>], iteration_bounds = array<i64: 1>, scalar_prefetch = 0 : i64, scratch_operands = 0 : i64, tpu.core_type = #tpu.core_type<tc>, window_params = [{pipeline_mode = #tpu.pipeline_mode<synchronous>, transform_indices = @transform_0, window_bounds = array<i64: 16, 72>}, {transform_indices = @transform_1, window_bounds = array<i64: 72, 128>}, {pipeline_mode = #tpu.pipeline_mode<synchronous>, transform_indices = @transform_2, window_bounds = array<i64: 16, 1>}, {transform_indices = @transform_3, window_bounds = array<i64: 16, 128>}]} {
    %c0 = arith.constant 0 : index
    %c0_0 = arith.constant 0 : index
    %0 = vector.load %arg1[%c0, %c0_0] : memref<16x72xbf16, #tpu.memory_space<vmem>>, vector<16x72xbf16>
    %c0_1 = arith.constant 0 : index
    %c0_2 = arith.constant 0 : index
    %1 = vector.load %arg2[%c0_1, %c0_2] : memref<72x128xbf16, #tpu.memory_space<vmem>>, vector<72x128xbf16>
    %cst = arith.constant dense<0.000000e+00> : vector<16x128xf32>
    %2 = tpu.matmul %0, %1, %cst {dimension_numbers = #tpu.dot_dimension_numbers<[1], [0], [0], [1], [0, 0, 1, 1], [], []>} : vector<16x72xbf16>, vector<72x128xbf16>, vector<16x128xf32> -> vector<16x128xf32>
    %c0_3 = arith.constant 0 : index
    %c0_4 = arith.constant 0 : index
    %3 = vector.load %arg3[%c0_3, %c0_4] : memref<16x1xf32, #tpu.memory_space<vmem>>, vector<16x1xf32>
    %4 = vector.broadcast %3 : vector<16x1xf32> to vector<16x128xf32>
    %5 = arith.addf %2, %4 : vector<16x128xf32>
    %cst_5 = arith.constant 0.000000e+00 : f32
    %6 = vector.broadcast %cst_5 : f32 to vector<16x128xf32>
    %7 = arith.maximumf %5, %6 : vector<16x128xf32>
    %c0_6 = arith.constant 0 : index
    %c0_7 = arith.constant 0 : index
    %8 = vector.load %arg4[%c0_6, %c0_7] : memref<16x128xf32, #tpu.memory_space<vmem>>, vector<16x128xf32>
    tpu.vector_store %arg4[%c0_6, %c0_7], %7 {strides = array<i32>} : memref<16x128xf32, #tpu.memory_space<vmem>>, vector<16x128xf32>,
    return
  }
  func.func @transform_0(%arg0: i32) -> (i32, i32) {
    %c0_i32 = arith.constant 0 : i32
    %c0_i32_0 = arith.constant 0 : i32
    %c0_i32_1 = arith.constant 0 : i32
    return %c0_i32, %c0_i32_0 : i32, i32
  }
  func.func @transform_1(%arg0: i32) -> (i32, i32) {
    %c0_i32 = arith.constant 0 : i32
    %c0_i32_0 = arith.constant 0 : i32
    return %c0_i32, %arg0 : i32, i32
  }
  func.func @transform_2(%arg0: i32) -> (i32, i32) {
    %c0_i32 = arith.constant 0 : i32
    %c0_i32_0 = arith.constant 0 : i32
    %c0_i32_1 = arith.constant 0 : i32
    return %c0_i32, %c0_i32_0 : i32, i32
  }
  func.func @transform_3(%arg0: i32) -> (i32, i32) {
    %c0_i32 = arith.constant 0 : i32
    %c0_i32_0 = arith.constant 0 : i32
    return %c0_i32, %arg0 : i32, i32
  }
}

module attributes {stable_mosaic.version = 11 : i64} {
  func.func @_mm_kernel(%arg0: i32, %arg1: memref<32x144xbf16, #tpu.memory_space<vmem>>, %arg2: memref<32x144xbf16, #tpu.memory_space<vmem>>, %arg3: memref<144x128xbf16, #tpu.memory_space<vmem>>, %arg4: memref<144x128xbf16, #tpu.memory_space<vmem>>, %arg5: memref<32x1xf32, #tpu.memory_space<vmem>>, %arg6: memref<16x128xf32, #tpu.memory_space<vmem>>, %arg7: memref<16x128xf32, #tpu.memory_space<vmem>>, %arg8: memref<16x128xf32, #tpu.memory_space<vmem>>) attributes {dimension_semantics = [#tpu.dimension_semantics<parallel>], iteration_bounds = array<i64: 1>, scalar_prefetch = 0 : i64, scratch_operands = 0 : i64, tpu.core_type = #tpu.core_type<tc>, window_params = [{pipeline_mode = #tpu.pipeline_mode<synchronous>, transform_indices = @transform_0, window_bounds = array<i64: 32, 144>}, {pipeline_mode = #tpu.pipeline_mode<synchronous>, transform_indices = @transform_1, window_bounds = array<i64: 32, 144>}, {transform_indices = @transform_2, window_bounds = array<i64: 144, 128>}, {transform_indices = @transform_3, window_bounds = array<i64: 144, 128>}, {pipeline_mode = #tpu.pipeline_mode<synchronous>, transform_indices = @transform_4, window_bounds = array<i64: 32, 1>}, {transform_indices = @transform_5, window_bounds = array<i64: 16, 128>}, {transform_indices = @transform_6, window_bounds = array<i64: 16, 128>}, {transform_indices = @transform_7, window_bounds = array<i64: 16, 128>}]} {
    %c0 = arith.constant 0 : index
    %c0_0 = arith.constant 0 : index
    %0 = vector.load %arg1[%c0, %c0_0] : memref<32x144xbf16, #tpu.memory_space<vmem>>, vector<32x144xbf16>
    %c0_1 = arith.constant 0 : index
    %c0_2 = arith.constant 0 : index
    %1 = vector.load %arg3[%c0_1, %c0_2] : memref<144x128xbf16, #tpu.memory_space<vmem>>, vector<144x128xbf16>
    %cst = arith.constant dense<0.000000e+00> : vector<32x128xf32>
    %2 = tpu.matmul %0, %1, %cst {dimension_numbers = #tpu.dot_dimension_numbers<[1], [0], [0], [1], [0, 0, 1, 1], [], []>} : vector<32x144xbf16>, vector<144x128xbf16>, vector<32x128xf32> -> vector<32x128xf32>
    %c0_3 = arith.constant 0 : index
    %c0_4 = arith.constant 0 : index
    %3 = vector.load %arg2[%c0_3, %c0_4] : memref<32x144xbf16, #tpu.memory_space<vmem>>, vector<32x144xbf16>
    %c0_5 = arith.constant 0 : index
    %c0_6 = arith.constant 0 : index
    %4 = vector.load %arg4[%c0_5, %c0_6] : memref<144x128xbf16, #tpu.memory_space<vmem>>, vector<144x128xbf16>
    %cst_7 = arith.constant dense<0.000000e+00> : vector<32x128xf32>
    %5 = tpu.matmul %3, %4, %cst_7 {dimension_numbers = #tpu.dot_dimension_numbers<[1], [0], [0], [1], [0, 0, 1, 1], [], []>} : vector<32x144xbf16>, vector<144x128xbf16>, vector<32x128xf32> -> vector<32x128xf32>
    %6 = arith.addf %2, %5 : vector<32x128xf32>
    %c0_8 = arith.constant 0 : index
    %c0_9 = arith.constant 0 : index
    %7 = vector.load %arg5[%c0_8, %c0_9] : memref<32x1xf32, #tpu.memory_space<vmem>>, vector<32x1xf32>
    %8 = vector.broadcast %7 : vector<32x1xf32> to vector<32x128xf32>
    %9 = arith.addf %6, %8 : vector<32x128xf32>
    %10 = arith.negf %9 : vector<32x128xf32>
    %11 = math.exp %10 : vector<32x128xf32>
    %cst_10 = arith.constant 1.000000e+00 : f32
    %12 = vector.broadcast %cst_10 : f32 to vector<32x128xf32>
    %13 = arith.addf %12, %11 : vector<32x128xf32>
    %14 = arith.divf %12, %13 : vector<32x128xf32>
    %15 = vector.extract_strided_slice %14 {offsets = [0, 0], sizes = [16, 128], strides = [1, 1]} : vector<32x128xf32> to vector<16x128xf32>
    %c0_11 = arith.constant 0 : index
    %c0_12 = arith.constant 0 : index
    %16 = vector.load %arg6[%c0_11, %c0_12] : memref<16x128xf32, #tpu.memory_space<vmem>>, vector<16x128xf32>
    %17 = arith.mulf %15, %16 : vector<16x128xf32>
    %c0_13 = arith.constant 0 : index
    %c0_14 = arith.constant 0 : index
    %18 = vector.load %arg7[%c0_13, %c0_14] : memref<16x128xf32, #tpu.memory_space<vmem>>, vector<16x128xf32>
    tpu.vector_store %arg7[%c0_13, %c0_14], %17 {strides = array<i32>} : memref<16x128xf32, #tpu.memory_space<vmem>>, vector<16x128xf32>,
    %19 = vector.extract_strided_slice %14 {offsets = [16, 0], sizes = [16, 128], strides = [1, 1]} : vector<32x128xf32> to vector<16x128xf32>
    %c0_15 = arith.constant 0 : index
    %c0_16 = arith.constant 0 : index
    %20 = vector.load %arg8[%c0_15, %c0_16] : memref<16x128xf32, #tpu.memory_space<vmem>>, vector<16x128xf32>
    tpu.vector_store %arg8[%c0_15, %c0_16], %19 {strides = array<i32>} : memref<16x128xf32, #tpu.memory_space<vmem>>, vector<16x128xf32>,
    return
  }
  func.func @transform_0(%arg0: i32) -> (i32, i32) {
    %c0_i32 = arith.constant 0 : i32
    %c0_i32_0 = arith.constant 0 : i32
    %c0_i32_1 = arith.constant 0 : i32
    return %c0_i32, %c0_i32_0 : i32, i32
  }
  func.func @transform_1(%arg0: i32) -> (i32, i32) {
    %c0_i32 = arith.constant 0 : i32
    %c0_i32_0 = arith.constant 0 : i32
    %c0_i32_1 = arith.constant 0 : i32
    return %c0_i32, %c0_i32_0 : i32, i32
  }
  func.func @transform_2(%arg0: i32) -> (i32, i32) {
    %c0_i32 = arith.constant 0 : i32
    %c0_i32_0 = arith.constant 0 : i32
    return %c0_i32, %arg0 : i32, i32
  }
  func.func @transform_3(%arg0: i32) -> (i32, i32) {
    %c0_i32 = arith.constant 0 : i32
    %c0_i32_0 = arith.constant 0 : i32
    return %c0_i32, %arg0 : i32, i32
  }
  func.func @transform_4(%arg0: i32) -> (i32, i32) {
    %c0_i32 = arith.constant 0 : i32
    %c0_i32_0 = arith.constant 0 : i32
    %c0_i32_1 = arith.constant 0 : i32
    return %c0_i32, %c0_i32_0 : i32, i32
  }
  func.func @transform_5(%arg0: i32) -> (i32, i32) {
    %c0_i32 = arith.constant 0 : i32
    %c0_i32_0 = arith.constant 0 : i32
    return %c0_i32, %arg0 : i32, i32
  }
  func.func @transform_6(%arg0: i32) -> (i32, i32) {
    %c0_i32 = arith.constant 0 : i32
    %c0_i32_0 = arith.constant 0 : i32
    return %c0_i32, %arg0 : i32, i32
  }
  func.func @transform_7(%arg0: i32) -> (i32, i32) {
    %c0_i32 = arith.constant 0 : i32
    %c0_i32_0 = arith.constant 0 : i32
    return %c0_i32, %arg0 : i32, i32
  }
}

module attributes {stable_mosaic.version = 11 : i64} {
  func.func @_mm_kernel(%arg0: i32, %arg1: memref<16x144xbf16, #tpu.memory_space<vmem>>, %arg2: memref<16x144xbf16, #tpu.memory_space<vmem>>, %arg3: memref<144x128xbf16, #tpu.memory_space<vmem>>, %arg4: memref<144x128xbf16, #tpu.memory_space<vmem>>, %arg5: memref<16x1xf32, #tpu.memory_space<vmem>>, %arg6: memref<16x128xf32, #tpu.memory_space<vmem>>, %arg7: memref<16x128xf32, #tpu.memory_space<vmem>>, %arg8: memref<16x128xf32, #tpu.memory_space<vmem>>) attributes {dimension_semantics = [#tpu.dimension_semantics<parallel>], iteration_bounds = array<i64: 1>, scalar_prefetch = 0 : i64, scratch_operands = 0 : i64, tpu.core_type = #tpu.core_type<tc>, window_params = [{pipeline_mode = #tpu.pipeline_mode<synchronous>, transform_indices = @transform_0, window_bounds = array<i64: 16, 144>}, {pipeline_mode = #tpu.pipeline_mode<synchronous>, transform_indices = @transform_1, window_bounds = array<i64: 16, 144>}, {transform_indices = @transform_2, window_bounds = array<i64: 144, 128>}, {transform_indices = @transform_3, window_bounds = array<i64: 144, 128>}, {pipeline_mode = #tpu.pipeline_mode<synchronous>, transform_indices = @transform_4, window_bounds = array<i64: 16, 1>}, {transform_indices = @transform_5, window_bounds = array<i64: 16, 128>}, {transform_indices = @transform_6, window_bounds = array<i64: 16, 128>}, {transform_indices = @transform_7, window_bounds = array<i64: 16, 128>}]} {
    %c0 = arith.constant 0 : index
    %c0_0 = arith.constant 0 : index
    %0 = vector.load %arg1[%c0, %c0_0] : memref<16x144xbf16, #tpu.memory_space<vmem>>, vector<16x144xbf16>
    %c0_1 = arith.constant 0 : index
    %c0_2 = arith.constant 0 : index
    %1 = vector.load %arg3[%c0_1, %c0_2] : memref<144x128xbf16, #tpu.memory_space<vmem>>, vector<144x128xbf16>
    %cst = arith.constant dense<0.000000e+00> : vector<16x128xf32>
    %2 = tpu.matmul %0, %1, %cst {dimension_numbers = #tpu.dot_dimension_numbers<[1], [0], [0], [1], [0, 0, 1, 1], [], []>} : vector<16x144xbf16>, vector<144x128xbf16>, vector<16x128xf32> -> vector<16x128xf32>
    %c0_3 = arith.constant 0 : index
    %c0_4 = arith.constant 0 : index
    %3 = vector.load %arg2[%c0_3, %c0_4] : memref<16x144xbf16, #tpu.memory_space<vmem>>, vector<16x144xbf16>
    %c0_5 = arith.constant 0 : index
    %c0_6 = arith.constant 0 : index
    %4 = vector.load %arg4[%c0_5, %c0_6] : memref<144x128xbf16, #tpu.memory_space<vmem>>, vector<144x128xbf16>
    %cst_7 = arith.constant dense<0.000000e+00> : vector<16x128xf32>
    %5 = tpu.matmul %3, %4, %cst_7 {dimension_numbers = #tpu.dot_dimension_numbers<[1], [0], [0], [1], [0, 0, 1, 1], [], []>} : vector<16x144xbf16>, vector<144x128xbf16>, vector<16x128xf32> -> vector<16x128xf32>
    %6 = arith.addf %2, %5 : vector<16x128xf32>
    %c0_8 = arith.constant 0 : index
    %c0_9 = arith.constant 0 : index
    %7 = vector.load %arg5[%c0_8, %c0_9] : memref<16x1xf32, #tpu.memory_space<vmem>>, vector<16x1xf32>
    %8 = vector.broadcast %7 : vector<16x1xf32> to vector<16x128xf32>
    %9 = arith.addf %6, %8 : vector<16x128xf32>
    %10 = math.tanh %9 : vector<16x128xf32>
    %c0_10 = arith.constant 0 : index
    %c0_11 = arith.constant 0 : index
    %11 = vector.load %arg6[%c0_10, %c0_11] : memref<16x128xf32, #tpu.memory_space<vmem>>, vector<16x128xf32>
    %cst_12 = arith.constant 1.000000e+00 : f32
    %12 = vector.broadcast %cst_12 : f32 to vector<16x128xf32>
    %13 = arith.subf %12, %11 : vector<16x128xf32>
    %c0_13 = arith.constant 0 : index
    %c0_14 = arith.constant 0 : index
    %14 = vector.load %arg7[%c0_13, %c0_14] : memref<16x128xf32, #tpu.memory_space<vmem>>, vector<16x128xf32>
    %15 = arith.mulf %13, %14 : vector<16x128xf32>
    %16 = arith.mulf %11, %10 : vector<16x128xf32>
    %17 = arith.addf %15, %16 : vector<16x128xf32>
    %c0_15 = arith.constant 0 : index
    %c0_16 = arith.constant 0 : index
    %18 = vector.load %arg8[%c0_15, %c0_16] : memref<16x128xf32, #tpu.memory_space<vmem>>, vector<16x128xf32>
    tpu.vector_store %arg8[%c0_15, %c0_16], %17 {strides = array<i32>} : memref<16x128xf32, #tpu.memory_space<vmem>>, vector<16x128xf32>,
    return
  }
  func.func @transform_0(%arg0: i32) -> (i32, i32) {
    %c0_i32 = arith.constant 0 : i32
    %c0_i32_0 = arith.constant 0 : i32
    %c0_i32_1 = arith.constant 0 : i32
    return %c0_i32, %c0_i32_0 : i32, i32
  }
  func.func @transform_1(%arg0: i32) -> (i32, i32) {
    %c0_i32 = arith.constant 0 : i32
    %c0_i32_0 = arith.constant 0 : i32
    %c0_i32_1 = arith.constant 0 : i32
    return %c0_i32, %c0_i32_0 : i32, i32
  }
  func.func @transform_2(%arg0: i32) -> (i32, i32) {
    %c0_i32 = arith.constant 0 : i32
    %c0_i32_0 = arith.constant 0 : i32
    return %c0_i32, %arg0 : i32, i32
  }
  func.func @transform_3(%arg0: i32) -> (i32, i32) {
    %c0_i32 = arith.constant 0 : i32
    %c0_i32_0 = arith.constant 0 : i32
    return %c0_i32, %arg0 : i32, i32
  }
  func.func @transform_4(%arg0: i32) -> (i32, i32) {
    %c0_i32 = arith.constant 0 : i32
    %c0_i32_0 = arith.constant 0 : i32
    %c0_i32_1 = arith.constant 0 : i32
    return %c0_i32, %c0_i32_0 : i32, i32
  }
  func.func @transform_5(%arg0: i32) -> (i32, i32) {
    %c0_i32 = arith.constant 0 : i32
    %c0_i32_0 = arith.constant 0 : i32
    return %c0_i32, %arg0 : i32, i32
  }
  func.func @transform_6(%arg0: i32) -> (i32, i32) {
    %c0_i32 = arith.constant 0 : i32
    %c0_i32_0 = arith.constant 0 : i32
    return %c0_i32, %arg0 : i32, i32
  }
  func.func @transform_7(%arg0: i32) -> (i32, i32) {
    %c0_i32 = arith.constant 0 : i32
    %c0_i32_0 = arith.constant 0 : i32
    return %c0_i32, %arg0 : i32, i32
  }
}

module attributes {stable_mosaic.version = 11 : i64} {
  func.func @_mm_kernel(%arg0: i32, %arg1: memref<32x64xbf16, #tpu.memory_space<vmem>>, %arg2: memref<64x128xbf16, #tpu.memory_space<vmem>>, %arg3: memref<32x1xf32, #tpu.memory_space<vmem>>, %arg4: memref<32x128xf32, #tpu.memory_space<vmem>>, %arg5: memref<32x128xf32, #tpu.memory_space<vmem>>) attributes {dimension_semantics = [#tpu.dimension_semantics<parallel>], iteration_bounds = array<i64: 1>, scalar_prefetch = 0 : i64, scratch_operands = 0 : i64, tpu.core_type = #tpu.core_type<tc>, window_params = [{pipeline_mode = #tpu.pipeline_mode<synchronous>, transform_indices = @transform_0, window_bounds = array<i64: 32, 64>}, {transform_indices = @transform_1, window_bounds = array<i64: 64, 128>}, {pipeline_mode = #tpu.pipeline_mode<synchronous>, transform_indices = @transform_2, window_bounds = array<i64: 32, 1>}, {transform_indices = @transform_3, window_bounds = array<i64: 32, 128>}, {transform_indices = @transform_4, window_bounds = array<i64: 32, 128>}]} {
    %c0 = arith.constant 0 : index
    %c0_0 = arith.constant 0 : index
    %0 = vector.load %arg1[%c0, %c0_0] : memref<32x64xbf16, #tpu.memory_space<vmem>>, vector<32x64xbf16>
    %c0_1 = arith.constant 0 : index
    %c0_2 = arith.constant 0 : index
    %1 = vector.load %arg2[%c0_1, %c0_2] : memref<64x128xbf16, #tpu.memory_space<vmem>>, vector<64x128xbf16>
    %cst = arith.constant dense<0.000000e+00> : vector<32x128xf32>
    %2 = tpu.matmul %0, %1, %cst {dimension_numbers = #tpu.dot_dimension_numbers<[1], [0], [0], [1], [0, 0, 1, 1], [], []>} : vector<32x64xbf16>, vector<64x128xbf16>, vector<32x128xf32> -> vector<32x128xf32>
    %c0_3 = arith.constant 0 : index
    %c0_4 = arith.constant 0 : index
    %3 = vector.load %arg3[%c0_3, %c0_4] : memref<32x1xf32, #tpu.memory_space<vmem>>, vector<32x1xf32>
    %4 = vector.broadcast %3 : vector<32x1xf32> to vector<32x128xf32>
    %5 = arith.addf %2, %4 : vector<32x128xf32>
    %c0_5 = arith.constant 0 : index
    %c0_6 = arith.constant 0 : index
    %6 = vector.load %arg4[%c0_5, %c0_6] : memref<32x128xf32, #tpu.memory_space<vmem>>, vector<32x128xf32>
    %7 = arith.addf %5, %6 : vector<32x128xf32>
    %cst_7 = arith.constant 0.000000e+00 : f32
    %8 = vector.broadcast %cst_7 : f32 to vector<32x128xf32>
    %9 = arith.maximumf %7, %8 : vector<32x128xf32>
    %c0_8 = arith.constant 0 : index
    %c0_9 = arith.constant 0 : index
    %10 = vector.load %arg5[%c0_8, %c0_9] : memref<32x128xf32, #tpu.memory_space<vmem>>, vector<32x128xf32>
    tpu.vector_store %arg5[%c0_8, %c0_9], %9 {strides = array<i32>} : memref<32x128xf32, #tpu.memory_space<vmem>>, vector<32x128xf32>,
    return
  }
  func.func @transform_0(%arg0: i32) -> (i32, i32) {
    %c0_i32 = arith.constant 0 : i32
    %c0_i32_0 = arith.constant 0 : i32
    %c0_i32_1 = arith.constant 0 : i32
    return %c0_i32, %c0_i32_0 : i32, i32
  }
  func.func @transform_1(%arg0: i32) -> (i32, i32) {
    %c0_i32 = arith.constant 0 : i32
    %c0_i32_0 = arith.constant 0 : i32
    return %c0_i32, %arg0 : i32, i32
  }
  func.func @transform_2(%arg0: i32) -> (i32, i32) {
    %c0_i32 = arith.constant 0 : i32
    %c0_i32_0 = arith.constant 0 : i32
    %c0_i32_1 = arith.constant 0 : i32
    return %c0_i32, %c0_i32_0 : i32, i32
  }
  func.func @transform_3(%arg0: i32) -> (i32, i32) {
    %c0_i32 = arith.constant 0 : i32
    %c0_i32_0 = arith.constant 0 : i32
    return %c0_i32, %arg0 : i32, i32
  }
  func.func @transform_4(%arg0: i32) -> (i32, i32) {
    %c0_i32 = arith.constant 0 : i32
    %c0_i32_0 = arith.constant 0 : i32
    return %c0_i32, %arg0 : i32, i32
  }
}

module attributes {stable_mosaic.version = 11 : i64} {
  func.func @_mm_kernel(%arg0: i32, %arg1: memref<4x32xbf16, #tpu.memory_space<vmem>>, %arg2: memref<32x256xbf16, #tpu.memory_space<vmem>>, %arg3: memref<4x1xf32, #tpu.memory_space<vmem>>, %arg4: memref<4x256xf32, #tpu.memory_space<vmem>>) attributes {dimension_semantics = [#tpu.dimension_semantics<parallel>], iteration_bounds = array<i64: 2>, scalar_prefetch = 0 : i64, scratch_operands = 0 : i64, tpu.core_type = #tpu.core_type<tc>, window_params = [{pipeline_mode = #tpu.pipeline_mode<synchronous>, transform_indices = @transform_0, window_bounds = array<i64: 4, 32>}, {transform_indices = @transform_1, window_bounds = array<i64: 32, 256>}, {pipeline_mode = #tpu.pipeline_mode<synchronous>, transform_indices = @transform_2, window_bounds = array<i64: 4, 1>}, {transform_indices = @transform_3, window_bounds = array<i64: 4, 256>}]} {
    %c0 = arith.constant 0 : index
    %c0_0 = arith.constant 0 : index
    %0 = vector.load %arg1[%c0, %c0_0] : memref<4x32xbf16, #tpu.memory_space<vmem>>, vector<4x32xbf16>
    %c0_1 = arith.constant 0 : index
    %c0_2 = arith.constant 0 : index
    %1 = vector.load %arg2[%c0_1, %c0_2] : memref<32x256xbf16, #tpu.memory_space<vmem>>, vector<32x256xbf16>
    %cst = arith.constant dense<0.000000e+00> : vector<4x256xf32>
    %2 = tpu.matmul %0, %1, %cst {dimension_numbers = #tpu.dot_dimension_numbers<[1], [0], [0], [1], [0, 0, 1, 1], [], []>} : vector<4x32xbf16>, vector<32x256xbf16>, vector<4x256xf32> -> vector<4x256xf32>
    %c0_3 = arith.constant 0 : index
    %c0_4 = arith.constant 0 : index
    %3 = vector.load %arg3[%c0_3, %c0_4] : memref<4x1xf32, #tpu.memory_space<vmem>>, vector<4x1xf32>
    %4 = vector.broadcast %3 : vector<4x1xf32> to vector<4x256xf32>
    %5 = arith.addf %2, %4 : vector<4x256xf32>
    %c0_5 = arith.constant 0 : index
    %c0_6 = arith.constant 0 : index
    %6 = vector.load %arg4[%c0_5, %c0_6] : memref<4x256xf32, #tpu.memory_space<vmem>>, vector<4x256xf32>
    tpu.vector_store %arg4[%c0_5, %c0_6], %5 {strides = array<i32>} : memref<4x256xf32, #tpu.memory_space<vmem>>, vector<4x256xf32>,
    return
  }
  func.func @transform_0(%arg0: i32) -> (i32, i32) {
    %c0_i32 = arith.constant 0 : i32
    %c0_i32_0 = arith.constant 0 : i32
    %c0_i32_1 = arith.constant 0 : i32
    return %c0_i32, %c0_i32_0 : i32, i32
  }
  func.func @transform_1(%arg0: i32) -> (i32, i32) {
    %c0_i32 = arith.constant 0 : i32
    %c0_i32_0 = arith.constant 0 : i32
    return %c0_i32, %arg0 : i32, i32
  }
  func.func @transform_2(%arg0: i32) -> (i32, i32) {
    %c0_i32 = arith.constant 0 : i32
    %c0_i32_0 = arith.constant 0 : i32
    %c0_i32_1 = arith.constant 0 : i32
    return %c0_i32, %c0_i32_0 : i32, i32
  }
  func.func @transform_3(%arg0: i32) -> (i32, i32) {
    %c0_i32 = arith.constant 0 : i32
    %c0_i32_0 = arith.constant 0 : i32
    return %c0_i32, %arg0 : i32, i32
  }
}

</mosaic_0001>

<bundles_post_ra>
// kernel: tile.12
= control target key start
LH: loop header
LB: loop body
LE: loop exit
PB: predicated region body
PF: predicated region fallthrough
CT: control target
= control target key end

     0   :  { %s22_s0 = inlined_call_operand.vmem [shape: f32[8], index: 0, kind: input, shape index: {}]   ;;  %s23_s1 = inlined_call_operand.vmem [shape: f32[4,8], index: 1, kind: output, shape index: {}]  }
   0x1   :  { %v4_v0 = vld [vmem:[%s22_s0] ss:$0 sm:$0xff] }
   0x2   :  { %5 = vst [vmem:[%s23_s1] sm:$0xf] %v4_v0 }

// kernel: tile.0
= control target key start
LH: loop header
LB: loop body
LE: loop exit
PB: predicated region body
PF: predicated region fallthrough
CT: control target
= control target key end

     0   :  { %s67_s8 = smov 125   ;;  %vm8_vm0 = vcmask 7168   ;;  %s68_s11 = smov 126   ;;  %s118_s0 = inlined_call_operand.vmem [shape: f32[4,8], index: 0, kind: input, shape index: {}]   ;;  %s119_s1 = inlined_call_operand.vmem [shape: f32[32,1], index: 1, kind: output, shape index: {}]  }
   0x1   :  { %v5_v0 = vld [vmem:[%s118_s0] sm:$0xf]  ;;  %s66_s0 = smov 127   ;;  %s69_s12 = smov 124  }
   0x2   :  { %6 = vst [vmem:[#allocation0] sm:$0xf] %v5_v0  ;;  %s70_s13 = smov 123   ;;  %s71_s14 = smov 122  }
   0x3   :  { %s72_s15 = smov 121  }
   0x9   :  { %v10_v1 = vld [vmem:[#allocation0] sm:$0xf]  }
   0xa   :  { %v22_v2 = vld [vmem:[#allocation0] sm:$0xf]   ;;  %11 = vrot.lane.b32.xlu0 %v10_v1, %s66_s0 }
   0xb   :  { %23 = vrot.lane.b32.xlu1 %v22_v2, %s67_s8  ;;  %v16_v3 = vld [vmem:[#allocation0] sm:$0xf]  }
   0xc   :  { %v28_v4 = vld [vmem:[#allocation0] sm:$0xf]  }
   0xd   :  { %v7_v5 = vld [vmem:[#allocation0] sm:$0xf]  }
   0xe   :  { %9 = vst.msk [vmem:[%s119_s1] ss:$8 sm:$0xf] %vm8_vm0, %v7_v5   ;;  %17 = vrot.lane.b32.xlu0 %v16_v3, %s68_s11  ;;  %v34_v6 = vld [vmem:[#allocation0] sm:$0xf]  }
   0xf   :  { %29 = vrot.lane.b32.xlu1 %v28_v4, %s69_s12  ;;  %v40_v7 = vld [vmem:[#allocation0] sm:$0xf]  }
  0x10   :  { %v46_v8 = vld [vmem:[#allocation0] sm:$0xf]  }
  0x12   :  { %35 = vrot.lane.b32.xlu0 %v34_v6, %s70_s13 }
  0x13   :  { %41 = vrot.lane.b32.xlu1 %v40_v7, %s71_s14 }
  0x16   :  { %47 = vrot.lane.b32.xlu0 %v46_v8, %s72_s15 }
  0x7c   :  { %v12_v9 = vpop.permute.xlu0 %11  }
  0x7d   :  { %v24_v10 = vpop.permute.xlu1 %23   ;;  %52 = vst.msk [vmem:[%s119_s1 + $0x1] ss:$8 sm:$0xf] %vm8_vm0, %v12_v9  }
  0x7e   :  { %54 = vst.msk [vmem:[%s119_s1 + $0x3] ss:$8 sm:$0xf] %vm8_vm0, %v24_v10  }
  0x80   :  { %v18_v11 = vpop.permute.xlu0 %17  }
  0x81   :  { %v30_v12 = vpop.permute.xlu1 %29   ;;  %53 = vst.msk [vmem:[%s119_s1 + $0x2] ss:$8 sm:$0xf] %vm8_vm0, %v18_v11  }
  0x82   :  { %55 = vst.msk [vmem:[%s119_s1 + $0x4] ss:$8 sm:$0xf] %vm8_vm0, %v30_v12  }
  0x84   :  { %v36_v13 = vpop.permute.xlu0 %35  }
  0x85   :  { %v42_v14 = vpop.permute.xlu1 %41   ;;  %56 = vst.msk [vmem:[%s119_s1 + $0x5] ss:$8 sm:$0xf] %vm8_vm0, %v36_v13  }
  0x86   :  { %57 = vst.msk [vmem:[%s119_s1 + $0x6] ss:$8 sm:$0xf] %vm8_vm0, %v42_v14  }
  0x88   :  { %v48_v15 = vpop.permute.xlu0 %47  }
  0x89   :  { %58 = vst.msk [vmem:[%s119_s1 + $0x7] ss:$8 sm:$0xf] %vm8_vm0, %v48_v15  }

// kernel: tile.17
= control target key start
LH: loop header
LB: loop body
LE: loop exit
PB: predicated region body
PF: predicated region fallthrough
CT: control target
= control target key end

     0   :  { %s20_s0 = inlined_call_operand.<no memory space> [shape: f32[], index: 0, kind: input, shape index: {}]   ;;  %s21_s1 = inlined_call_operand.vmem [shape: f32[4,1], index: 1, kind: output, shape index: {}]  }
   0x1   :  { %v2_v0 = vstv %s20_s0 }
   0x2   :  { %3 = vst [vmem:[%s21_s1] sm:$0xf] %v2_v0 }

</bundles_post_ra>
